<compile_context>
chip_gen: v7x
topology: tpu7x:2x2x1
jax: 0.10.0
libtpu: 0.0.40
codegen_flags: <defaults>
</compile_context>

<pallas_src>
import functools

import jax
import jax.numpy as jnp
import numpy as np
from jax.experimental import pallas as pl
from jax.experimental.pallas import tpu as pltpu

LANE = 128
SUBLANE = 8


def _round_up(x, m):
    return ((x + m - 1) // m) * m


def _tpu_topology():
    """Best-effort (tensorcores_per_chip, vmem_capacity_bytes); safe fallbacks."""
    cores, vmem_cap = 1, 128 << 20            # v5e / v6e defaults
    try:
        kind = jax.devices()[0].device_kind.lower()
        if "v7" in kind:                      # v7x: 2 TensorCores, 64 MiB VMEM/TC
            cores, vmem_cap = 2, 64 << 20
    except Exception:
        pass
    try:
        cap = getattr(pltpu.get_tpu_info(), "vmem_capacity_bytes", None)
        if cap:
            vmem_cap = int(cap)
    except Exception:
        pass
    return cores, vmem_cap


def _tile_vmem_bytes(tm, s_dim, h, a_dim):
    """Conservative VMEM footprint of one grid step (f32; lanes pad to 128)."""
    f32 = 4
    io = 2 * tm * _round_up(s_dim, LANE) * f32        # states block, double-buffered
    io += 2 * tm * _round_up(a_dim, LANE) * f32       # output block, double-buffered
    inter = 4 * tm * _round_up(h, LANE) * f32         # (tm, H) intermediates / LN temps
    weights = 2 * f32 * (_round_up(s_dim, SUBLANE) * _round_up(h, LANE)
                         + _round_up(h, SUBLANE) * _round_up(a_dim, LANE)
                         + 6 * SUBLANE * _round_up(h, LANE)
                         + SUBLANE * _round_up(a_dim, LANE))
    return io + inter + weights


def _layer_norm(x, gamma, beta, eps):
    # Single-pass statistics: one pair of cross-lane reductions instead of two
    # dependent passes.  var clamped at 0 so rsqrt(var + eps) is always finite
    # (eps > 0), including on garbage rows of a clipped last block.
    inv_n = 1.0 / x.shape[-1]
    s1 = jnp.sum(x, axis=-1, keepdims=True)
    s2 = jnp.sum(x * x, axis=-1, keepdims=True)
    mu = s1 * inv_n
    var = jnp.maximum(s2 * inv_n - mu * mu, 0.0)
    return (x - mu) * jax.lax.rsqrt(var + eps) * gamma + beta


# ---------------------------------------------------------------------------
# Fused kernel: embed_state -> embed_ln -> [dropout + Mamba layers] -> ln_f
#               -> predict_action (Linear + tanh), all on one row tile.
# ---------------------------------------------------------------------------
def _fused_kernel(st_ref, ws_ref, bs_ref,
                  g1_ref, b1_ref, gf_ref, bf_ref,
                  wp_ref, bp_ref, out_ref, *, eps):
    # embed_state: (tm, S) @ (S, H) on the MXU, f32 accumulation.
    x = jnp.dot(st_ref[...], ws_ref[...],
                preferred_element_type=jnp.float32) + bs_ref[...]

    # embed_ln (per-token LayerNorm, f32 on the VPU/XLU, rsqrt on the EUP).
    x = _layer_norm(x, g1_ref[...], b1_ref[...], eps)

    # Model(): nn.Dropout is identity at inference time.
    # TODO(synk): the Mamba mixer blocks (Model.layers, class `Mamba`) are not
    # defined in the reference source and are treated as identity.  When real
    # Mamba layers are added, the return/action embeddings and the [r, s, a]
    # token interleave must be reinstated here, because the mixer couples
    # tokens along the sequence.

    # ln_f.
    x = _layer_norm(x, gf_ref[...], bf_ref[...], eps)

    # predict_action: Linear + tanh.  Output block is the unpadded act_dim
    # width (masked store) -> minimal HBM write traffic, no wrapper re-slice.
    out_ref[...] = jnp.tanh(
        jnp.dot(x, wp_ref[...], preferred_element_type=jnp.float32)
        + bp_ref[...])


# ---------------------------------------------------------------------------
# Wrapper
# ---------------------------------------------------------------------------
def decision_metamamba_forward(params, states, actions, returns_to_go,
                               *, tm_max=1024, ln_eps=1e-5):
    # `actions` / `returns_to_go` are accepted for API parity with the PyTorch
    # module.  With the (undefined) Mamba mixer reduced to identity, the
    # output depends only on the state tokens (LayerNorm and the action head
    # are per-token), so they are not read by the kernel.
    del actions, returns_to_go

    b, t, s_dim = states.shape
    h = params["w_state"].shape[1]
    a_dim = params["w_pred"].shape[1]
    bt = b * t

    # --- generation-aware tile / grid sizing -------------------------------
    num_tc, vmem_cap = _tpu_topology()
    vmem_limit = min(vmem_cap // 2, 32 << 20)      # scoped VMEM for this kernel
    tile_budget = (3 * vmem_limit) // 4            # headroom for compiler scratch

    tm_cap = max(SUBLANE, _round_up(tm_max, SUBLANE))
    while tm_cap > SUBLANE and _tile_vmem_bytes(tm_cap, s_dim, h, a_dim) > tile_budget:
        tm_cap //= 2

    if num_tc > 1 and bt >= 2 * num_tc * SUBLANE:
        # v7x: aim for >= 2 grid steps per TensorCore so the double-buffer
        # pipeline overlaps DMA with compute on both cores.
        tm = min(tm_cap, _round_up(pl.cdiv(bt, 2 * num_tc), SUBLANE))
    else:
        # v5e / v6e (single TC) or tiny bt: one big tile, fewest grid steps.
        tm = min(tm_cap, _round_up(bt, SUBLANE))
    grid = pl.cdiv(bt, tm)     # ragged last block is clipped by Pallas

    # reshape is a free view (contiguous); no pad, no extra HBM pass.
    states2d = states.reshape(bt, s_dim).astype(jnp.float32)

    # Advisory cost hint for XLA's scheduler around the custom call.
    flops = 2 * bt * (s_dim * h + h * a_dim) + 10 * bt * h
    transcendentals = bt * (a_dim + 2)              # tanh per out elem + 2 rsqrt/row
    bytes_accessed = 4 * (bt * s_dim + bt * a_dim
                          + s_dim * h + h * a_dim + 6 * h + a_dim)

    def row_spec(cols):
        return pl.BlockSpec((tm, cols), lambda i: (i, 0))

    def full_spec(shape):
        return pl.BlockSpec(shape, lambda i: (0, 0))

    # TODO(synk): if profiling shows exposed output-writeback DMA at large bt,
    # add pipeline_mode=pl.Buffered(3) on out_specs.
    out = pl.pallas_call(
        functools.partial(_fused_kernel, eps=ln_eps),
        grid=(grid,),
        in_specs=[
            row_spec(s_dim),                            # states tile
            full_spec((s_dim, h)), full_spec((1, h)),   # embed_state W, b
            full_spec((1, h)), full_spec((1, h)),       # embed_ln gamma, beta
            full_spec((1, h)), full_spec((1, h)),       # ln_f gamma, beta
            full_spec((h, a_dim)), full_spec((1, a_dim)),  # head W, b (unpadded)
        ],
        out_specs=row_spec(a_dim),
        out_shape=jax.ShapeDtypeStruct((bt, a_dim), jnp.float32),
        compiler_params=pltpu.CompilerParams(
            dimension_semantics=("parallel",),
            vmem_limit_bytes=vmem_limit),
        cost_estimate=pl.CostEstimate(
            flops=flops,
            transcendentals=transcendentals,
            bytes_accessed=bytes_accessed),
    )(states2d,
      params["w_state"], params["b_state"],
      params["ln1_w"], params["ln1_b"],
      params["lnf_w"], params["lnf_b"],
      params["w_pred"], params["b_pred"])

    return out.reshape(b, t, a_dim)


# ---------------------------------------------------------------------------
# Deterministic synthetic parameter init (mirrors module shapes)
# ---------------------------------------------------------------------------
def init_params(key, state_dim, act_dim, hidden):
    k0, k1, k2, k3 = jax.random.split(key, 4)
    std = 0.02
    f32 = jnp.float32
    return {
        # Linear weights stored transposed: (in_features, out_features)
        "w_state": std * jax.random.normal(k0, (state_dim, hidden), f32),
        "b_state": jnp.zeros((1, hidden), f32),
        "w_return": std * jax.random.normal(k1, (1, hidden), f32),
        "b_return": jnp.zeros((1, hidden), f32),
        "w_action": std * jax.random.normal(k2, (act_dim, hidden), f32),
        "b_action": jnp.zeros((1, hidden), f32),
        "ln1_w": jnp.ones((1, hidden), f32),
        "ln1_b": jnp.zeros((1, hidden), f32),
        "lnf_w": jnp.ones((1, hidden), f32),
        "lnf_b": jnp.zeros((1, hidden), f32),
        "w_pred": std * jax.random.normal(k3, (hidden, act_dim), f32),
        "b_pred": jnp.zeros((1, act_dim), f32),
    }


def reference_forward(params, states, actions, returns_to_go, eps=1e-5):
    # Full-fidelity reference: computes all three embeddings, the [r,s,a]
    # stack/permute interleave, both LayerNorms, and the action head.
    b, t, _ = states.shape
    h = params["w_state"].shape[1]
    st = states @ params["w_state"] + params["b_state"]
    rt = returns_to_go @ params["w_return"] + params["b_return"]
    ac = actions @ params["w_action"] + params["b_action"]
    stacked = jnp.stack([rt, st, ac], axis=1).transpose(0, 2, 1, 3)
    stacked = stacked.reshape(b, 3 * t, h)

    def ln(x, g, beta):
        mu = x.mean(-1, keepdims=True)
        var = ((x - mu) ** 2).mean(-1, keepdims=True)
        return (x - mu) / jnp.sqrt(var + eps) * g + beta

    x = ln(stacked, params["ln1_w"], params["ln1_b"])
    # Model: dropout (identity) + identity Mamba layers + ln_f
    x = ln(x, params["lnf_w"], params["lnf_b"])
    x = x.reshape(b, t, 3, h).transpose(0, 2, 1, 3)
    state_reps = x[:, 1]
    return jnp.tanh(state_reps @ params["w_pred"] + params["b_pred"])


if __name__ == "__main__":
    B, T = 2, 8           # batch, sequence length
    STATE_DIM = 11
    ACT_DIM = 3
    HIDDEN = 32

    key = jax.random.PRNGKey(0)
    kp, ks, ka, kr = jax.random.split(key, 4)

    params = init_params(kp, STATE_DIM, ACT_DIM, HIDDEN)
    states = jax.random.normal(ks, (B, T, STATE_DIM), jnp.float32)
    actions = jax.random.normal(ka, (B, T, ACT_DIM), jnp.float32)
    returns_to_go = jax.random.normal(kr, (B, T, 1), jnp.float32)

    fwd = jax.jit(decision_metamamba_forward)
    out = fwd(params, states, actions, returns_to_go)
    out = jax.block_until_ready(out)

    ref = reference_forward(params, states, actions, returns_to_go)
    assert out.shape == (B, T, ACT_DIM)
    np.testing.assert_allclose(np.asarray(out), np.asarray(ref),
                               rtol=1e-5, atol=1e-5)
    print("KERNEL_OK")
</pallas_src>

<mosaic_0001>
module attributes {stable_mosaic.version = 11 : i64} {
  func.func @_fused_kernel(%arg0: i32, %arg1: memref<16x11xf32, #tpu.memory_space<vmem>>, %arg2: memref<11x32xf32, #tpu.memory_space<vmem>>, %arg3: memref<1x32xf32, #tpu.memory_space<vmem>>, %arg4: memref<1x32xf32, #tpu.memory_space<vmem>>, %arg5: memref<1x32xf32, #tpu.memory_space<vmem>>, %arg6: memref<1x32xf32, #tpu.memory_space<vmem>>, %arg7: memref<1x32xf32, #tpu.memory_space<vmem>>, %arg8: memref<32x3xf32, #tpu.memory_space<vmem>>, %arg9: memref<1x3xf32, #tpu.memory_space<vmem>>, %arg10: memref<16x3xf32, #tpu.memory_space<vmem>>) attributes {dimension_semantics = [#tpu.dimension_semantics<parallel>], iteration_bounds = array<i64: 1>, scalar_prefetch = 0 : i64, scratch_operands = 0 : i64, tpu.core_type = #tpu.core_type<tc>, window_params = [{transform_indices = @transform_0, window_bounds = array<i64: 16, 11>}, {pipeline_mode = #tpu.pipeline_mode<synchronous>, transform_indices = @transform_1, window_bounds = array<i64: 11, 32>}, {pipeline_mode = #tpu.pipeline_mode<synchronous>, transform_indices = @transform_2, window_bounds = array<i64: 1, 32>}, {pipeline_mode = #tpu.pipeline_mode<synchronous>, transform_indices = @transform_3, window_bounds = array<i64: 1, 32>}, {pipeline_mode = #tpu.pipeline_mode<synchronous>, transform_indices = @transform_4, window_bounds = array<i64: 1, 32>}, {pipeline_mode = #tpu.pipeline_mode<synchronous>, transform_indices = @transform_5, window_bounds = array<i64: 1, 32>}, {pipeline_mode = #tpu.pipeline_mode<synchronous>, transform_indices = @transform_6, window_bounds = array<i64: 1, 32>}, {pipeline_mode = #tpu.pipeline_mode<synchronous>, transform_indices = @transform_7, window_bounds = array<i64: 32, 3>}, {pipeline_mode = #tpu.pipeline_mode<synchronous>, transform_indices = @transform_8, window_bounds = array<i64: 1, 3>}, {transform_indices = @transform_9, window_bounds = array<i64: 16, 3>}]} {
    %c0 = arith.constant 0 : index
    %c0_0 = arith.constant 0 : index
    %0 = vector.load %arg1[%c0, %c0_0] : memref<16x11xf32, #tpu.memory_space<vmem>>, vector<16x11xf32>
    %c0_1 = arith.constant 0 : index
    %c0_2 = arith.constant 0 : index
    %1 = vector.load %arg2[%c0_1, %c0_2] : memref<11x32xf32, #tpu.memory_space<vmem>>, vector<11x32xf32>
    %cst = arith.constant dense<0.000000e+00> : vector<16x32xf32>
    %2 = tpu.matmul %0, %1, %cst {dimension_numbers = #tpu.dot_dimension_numbers<[1], [0], [0], [1], [0, 0, 1, 1], [], []>} : vector<16x11xf32>, vector<11x32xf32>, vector<16x32xf32> -> vector<16x32xf32>
    %c0_3 = arith.constant 0 : index
    %c0_4 = arith.constant 0 : index
    %3 = vector.load %arg3[%c0_3, %c0_4] : memref<1x32xf32, #tpu.memory_space<vmem>>, vector<1x32xf32>
    %4 = vector.broadcast %3 : vector<1x32xf32> to vector<16x32xf32>
    %5 = arith.addf %2, %4 : vector<16x32xf32>
    %c0_5 = arith.constant 0 : index
    %c0_6 = arith.constant 0 : index
    %6 = vector.load %arg4[%c0_5, %c0_6] : memref<1x32xf32, #tpu.memory_space<vmem>>, vector<1x32xf32>
    %c0_7 = arith.constant 0 : index
    %c0_8 = arith.constant 0 : index
    %7 = vector.load %arg5[%c0_7, %c0_8] : memref<1x32xf32, #tpu.memory_space<vmem>>, vector<1x32xf32>
    %cst_9 = arith.constant dense<0.000000e+00> : vector<16xf32>
    %8 = vector.multi_reduction <add>, %5, %cst_9 [1] : vector<16x32xf32> to vector<16xf32>
    %9 = vector.shape_cast %8 : vector<16xf32> to vector<16x1xf32>
    %10 = arith.mulf %5, %5 : vector<16x32xf32>
    %cst_10 = arith.constant dense<0.000000e+00> : vector<16xf32>
    %11 = vector.multi_reduction <add>, %10, %cst_10 [1] : vector<16x32xf32> to vector<16xf32>
    %12 = vector.shape_cast %11 : vector<16xf32> to vector<16x1xf32>
    %cst_11 = arith.constant 3.125000e-02 : f32
    %13 = vector.broadcast %cst_11 : f32 to vector<16x1xf32>
    %14 = arith.mulf %9, %13 : vector<16x1xf32>
    %cst_12 = arith.constant 3.125000e-02 : f32
    %15 = vector.broadcast %cst_12 : f32 to vector<16x1xf32>
    %16 = arith.mulf %12, %15 : vector<16x1xf32>
    %17 = arith.mulf %14, %14 : vector<16x1xf32>
    %18 = arith.subf %16, %17 : vector<16x1xf32>
    %cst_13 = arith.constant 0.000000e+00 : f32
    %19 = vector.broadcast %cst_13 : f32 to vector<16x1xf32>
    %20 = arith.maximumf %18, %19 : vector<16x1xf32>
    %21 = vector.broadcast %14 : vector<16x1xf32> to vector<16x32xf32>
    %22 = arith.subf %5, %21 : vector<16x32xf32>
    %cst_14 = arith.constant 9.99999974E-6 : f32
    %23 = vector.broadcast %cst_14 : f32 to vector<16x1xf32>
    %24 = arith.addf %20, %23 : vector<16x1xf32>
    %25 = math.rsqrt %24 : vector<16x1xf32>
    %26 = vector.broadcast %25 : vector<16x1xf32> to vector<16x32xf32>
    %27 = arith.mulf %22, %26 : vector<16x32xf32>
    %28 = vector.broadcast %6 : vector<1x32xf32> to vector<16x32xf32>
    %29 = arith.mulf %27, %28 : vector<16x32xf32>
    %30 = vector.broadcast %7 : vector<1x32xf32> to vector<16x32xf32>
    %31 = arith.addf %29, %30 : vector<16x32xf32>
    %c0_15 = arith.constant 0 : index
    %c0_16 = arith.constant 0 : index
    %32 = vector.load %arg6[%c0_15, %c0_16] : memref<1x32xf32, #tpu.memory_space<vmem>>, vector<1x32xf32>
    %c0_17 = arith.constant 0 : index
    %c0_18 = arith.constant 0 : index
    %33 = vector.load %arg7[%c0_17, %c0_18] : memref<1x32xf32, #tpu.memory_space<vmem>>, vector<1x32xf32>
    %cst_19 = arith.constant dense<0.000000e+00> : vector<16xf32>
    %34 = vector.multi_reduction <add>, %31, %cst_19 [1] : vector<16x32xf32> to vector<16xf32>
    %35 = vector.shape_cast %34 : vector<16xf32> to vector<16x1xf32>
    %36 = arith.mulf %31, %31 : vector<16x32xf32>
    %cst_20 = arith.constant dense<0.000000e+00> : vector<16xf32>
    %37 = vector.multi_reduction <add>, %36, %cst_20 [1] : vector<16x32xf32> to vector<16xf32>
    %38 = vector.shape_cast %37 : vector<16xf32> to vector<16x1xf32>
    %cst_21 = arith.constant 3.125000e-02 : f32
    %39 = vector.broadcast %cst_21 : f32 to vector<16x1xf32>
    %40 = arith.mulf %35, %39 : vector<16x1xf32>
    %cst_22 = arith.constant 3.125000e-02 : f32
    %41 = vector.broadcast %cst_22 : f32 to vector<16x1xf32>
    %42 = arith.mulf %38, %41 : vector<16x1xf32>
    %43 = arith.mulf %40, %40 : vector<16x1xf32>
    %44 = arith.subf %42, %43 : vector<16x1xf32>
    %cst_23 = arith.constant 0.000000e+00 : f32
    %45 = vector.broadcast %cst_23 : f32 to vector<16x1xf32>
    %46 = arith.maximumf %44, %45 : vector<16x1xf32>
    %47 = vector.broadcast %40 : vector<16x1xf32> to vector<16x32xf32>
    %48 = arith.subf %31, %47 : vector<16x32xf32>
    %cst_24 = arith.constant 9.99999974E-6 : f32
    %49 = vector.broadcast %cst_24 : f32 to vector<16x1xf32>
    %50 = arith.addf %46, %49 : vector<16x1xf32>
    %51 = math.rsqrt %50 : vector<16x1xf32>
    %52 = vector.broadcast %51 : vector<16x1xf32> to vector<16x32xf32>
    %53 = arith.mulf %48, %52 : vector<16x32xf32>
    %54 = vector.broadcast %32 : vector<1x32xf32> to vector<16x32xf32>
    %55 = arith.mulf %53, %54 : vector<16x32xf32>
    %56 = vector.broadcast %33 : vector<1x32xf32> to vector<16x32xf32>
    %57 = arith.addf %55, %56 : vector<16x32xf32>
    %c0_25 = arith.constant 0 : index
    %c0_26 = arith.constant 0 : index
    %58 = vector.load %arg8[%c0_25, %c0_26] : memref<32x3xf32, #tpu.memory_space<vmem>>, vector<32x3xf32>
    %cst_27 = arith.constant dense<0.000000e+00> : vector<16x3xf32>
    %59 = tpu.matmul %57, %58, %cst_27 {dimension_numbers = #tpu.dot_dimension_numbers<[1], [0], [0], [1], [0, 0, 1, 1], [], []>} : vector<16x32xf32>, vector<32x3xf32>, vector<16x3xf32> -> vector<16x3xf32>
    %c0_28 = arith.constant 0 : index
    %c0_29 = arith.constant 0 : index
    %60 = vector.load %arg9[%c0_28, %c0_29] : memref<1x3xf32, #tpu.memory_space<vmem>>, vector<1x3xf32>
    %61 = vector.broadcast %60 : vector<1x3xf32> to vector<16x3xf32>
    %62 = arith.addf %59, %61 : vector<16x3xf32>
    %63 = math.tanh %62 : vector<16x3xf32>
    %c0_30 = arith.constant 0 : index
    %c0_31 = arith.constant 0 : index
    %64 = vector.load %arg10[%c0_30, %c0_31] : memref<16x3xf32, #tpu.memory_space<vmem>>, vector<16x3xf32>
    tpu.vector_store %arg10[%c0_30, %c0_31], %63 {strides = array<i32>} : memref<16x3xf32, #tpu.memory_space<vmem>>, vector<16x3xf32>,
    return
  }
  func.func @transform_0(%arg0: i32) -> (i32, i32) {
    %c0_i32 = arith.constant 0 : i32
    %c0_i32_0 = arith.constant 0 : i32
    return %arg0, %c0_i32 : i32, i32
  }
  func.func @transform_1(%arg0: i32) -> (i32, i32) {
    %c0_i32 = arith.constant 0 : i32
    %c0_i32_0 = arith.constant 0 : i32
    %c0_i32_1 = arith.constant 0 : i32
    return %c0_i32, %c0_i32_0 : i32, i32
  }
  func.func @transform_2(%arg0: i32) -> (i32, i32) {
    %c0_i32 = arith.constant 0 : i32
    %c0_i32_0 = arith.constant 0 : i32
    %c0_i32_1 = arith.constant 0 : i32
    return %c0_i32, %c0_i32_0 : i32, i32
  }
  func.func @transform_3(%arg0: i32) -> (i32, i32) {
    %c0_i32 = arith.constant 0 : i32
    %c0_i32_0 = arith.constant 0 : i32
    %c0_i32_1 = arith.constant 0 : i32
    return %c0_i32, %c0_i32_0 : i32, i32
  }
  func.func @transform_4(%arg0: i32) -> (i32, i32) {
    %c0_i32 = arith.constant 0 : i32
    %c0_i32_0 = arith.constant 0 : i32
    %c0_i32_1 = arith.constant 0 : i32
    return %c0_i32, %c0_i32_0 : i32, i32
  }
  func.func @transform_5(%arg0: i32) -> (i32, i32) {
    %c0_i32 = arith.constant 0 : i32
    %c0_i32_0 = arith.constant 0 : i32
    %c0_i32_1 = arith.constant 0 : i32
    return %c0_i32, %c0_i32_0 : i32, i32
  }
  func.func @transform_6(%arg0: i32) -> (i32, i32) {
    %c0_i32 = arith.constant 0 : i32
    %c0_i32_0 = arith.constant 0 : i32
    %c0_i32_1 = arith.constant 0 : i32
    return %c0_i32, %c0_i32_0 : i32, i32
  }
  func.func @transform_7(%arg0: i32) -> (i32, i32) {
    %c0_i32 = arith.constant 0 : i32
    %c0_i32_0 = arith.constant 0 : i32
    %c0_i32_1 = arith.constant 0 : i32
    return %c0_i32, %c0_i32_0 : i32, i32
  }
  func.func @transform_8(%arg0: i32) -> (i32, i32) {
    %c0_i32 = arith.constant 0 : i32
    %c0_i32_0 = arith.constant 0 : i32
    %c0_i32_1 = arith.constant 0 : i32
    return %c0_i32, %c0_i32_0 : i32, i32
  }
  func.func @transform_9(%arg0: i32) -> (i32, i32) {
    %c0_i32 = arith.constant 0 : i32
    %c0_i32_0 = arith.constant 0 : i32
    return %arg0, %c0_i32 : i32, i32
  }
}

</mosaic_0001>

<bundles_post_ra>
// kernel: decision_metamamba_forward.1
= control target key start
LH: loop header
LB: loop body
LE: loop exit
PB: predicated region body
PF: predicated region fallthrough
CT: control target
= control target key end

     0   :  { %vm50_vm0 = vcmask 1042432   ;;  %vm43_vm1 = vcmask 89088   ;;  %vm397_vm2 = vmmov 1   ;;  %vm131_vm4 = vcmask 261120   ;;  %s506_s1 = inlined_call_operand.vmem [shape: f32[11,32], index: 1, kind: input, shape index: {}]   ;;  %s507_s0 = inlined_call_operand.vmem [shape: f32[16,11], index: 0, kind: input, shape index: {}]   ;;  %s508_s2 = inlined_call_operand.vmem [shape: f32[1,32], index: 2, kind: input, shape index: {}]   ;;  %s509_s3 = inlined_call_operand.vmem [shape: f32[1,32], index: 3, kind: input, shape index: {}]   ;;  %s510_s4 = inlined_call_operand.vmem [shape: f32[1,32], index: 4, kind: input, shape index: {}]   ;;  %s511_s7 = inlined_call_operand.vmem [shape: f32[32,3], index: 7, kind: input, shape index: {}]   ;;  %s512_s5 = inlined_call_operand.vmem [shape: f32[1,32], index: 5, kind: input, shape index: {}]   ;;  %s513_s6 = inlined_call_operand.vmem [shape: f32[1,32], index: 6, kind: input, shape index: {}]   ;;  %s514_s8 = inlined_call_operand.vmem [shape: f32[1,3], index: 8, kind: input, shape index: {}]   ;;  %s515_s9 = inlined_call_operand.vmem [shape: f32[16,3], index: 9, kind: output, shape index: {}]  }
   0x1   :  { %v34_v0 = vld [vmem:[%s506_s1] sm:$0xff]  ;;  %v35_v1 = vld [vmem:[%s506_s1 + $0x8] sm:$0x7]  ;;  %vm371_vm3 = vmpackc.low %vm50_vm0, %vm397_vm2  ;;  %vm324_vm5 = vcmask 23552  }
   0x2   :  { %v370_v2 = vpack.c.bf16 %v35_v1, %v34_v0  ;;  %v32_v3 = vld [vmem:[%s507_s0] sm:$0xff]  ;;  %v33_v4 = vld [vmem:[%s507_s0 + $0x8] sm:$0xff]  ;;  %v232_v52 = vld [vmem:[%s511_s7 + $0x10] sm:$0xff] }
   0x3   :  { %356 = vmatprep.mubr.msk.f32.mxu0 %vm43_vm1, %v32_v3  ;;  %v331_v5 = vld [vmem:[%s508_s2] ss:$0 sm:$0xff]  ;;  %v231_v51 = vld [vmem:[%s511_s7 + $0x8] sm:$0xff]  ;;  %v233_v54 = vld [vmem:[%s511_s7 + $0x18] sm:$0xff] }
   0x4   :  { %372 = vmatprep.subr.msk.bf16.mxu0 %vm371_vm3, %v370_v2  ;;  %v335_v34 = vld [vmem:[%s509_s3] ss:$0 sm:$0xff]  ;;  %v380_v55 = vpack.c.bf16 %v233_v54, %v232_v52 }
   0x5   :  { %375 = vmatpush3.bf16.msk.msra.mxu0 %vm371_vm3, %v370_v2  ;;  %v336_v36 = vld [vmem:[%s510_s4] ss:$0 sm:$0xff] }
   0x6   :  { %v230_v50 = vld [vmem:[%s511_s7] sm:$0xff] }
   0x7   :  { %v376_v53 = vpack.c.bf16 %v231_v51, %v230_v50 }
   0x8   :  { %357 = vmatmul.mubr.msk.f32.vlgmr.msra.gmra.mrb[0].mxu0 %vm43_vm1, %v33_v4 }
   0x9   :  { %377 = vmatprep.subr.bf16.mxu1 %v376_v53 }
   0xa   :  { %379 = vmatpush3.bf16.msra.mxu1 %v376_v53 }
   0xb   :  { %381 = vmatprep.subr.bf16.mxu1 %v380_v55 }
   0xe   :  { %383 = vmatpush3.bf16.msra.mxu1 %v380_v55 }
  0xdb   :  { %v358_v6 = vpop.f32.mrb[0].mxu0 }
  0xdc   :  { %v120_v7 = vpop.f32.mrb[1].mxu0  ;;  %v126_v8 = vadd.f32 %v358_v6, %v331_v5 }
  0xdd   :  { %v121_v9 = vadd.f32 %v331_v5, %v120_v7 }
  0xde   :  { %v139_v13 = vmul.f32 %v126_v8, %v126_v8  ;;  %v135_v14 = vsel %vm131_vm4, %v126_v8, 0.0 }
  0xdf   :  { %v132_v10 = vsel %vm131_vm4, %v121_v9, 0.0  ;;  %v138_v11 = vmul.f32 %v121_v9, %v121_v9 }
  0xe0   :  { %133 = vadd.xlane.f32.xlu0 %v132_v10  ;;  %v143_v15 = vsel %vm131_vm4, %v139_v13, 0.0  ;;  %v337_v10 = vld [vmem:[%s512_s5] ss:$0 sm:$0xff] }
  0xe1   :  { %v140_v12 = vsel %vm131_vm4, %v138_v11, 0.0 }
  0xe2   :  { %141 = vadd.xlane.f32.xlu1 %v140_v12  ;;  %v338_v12 = vld [vmem:[%s513_s6] ss:$0 sm:$0xff] }
  0xe4   :  { %136 = vadd.xlane.f32.xlu0 %v135_v14 }
  0xe6   :  { %144 = vadd.xlane.f32.xlu1 %v143_v15 }
 0x16d   :  { %v134_v16 = vpop.xlane.xlu0 %133 }
 0x16e   :  { %v146_v17 = vmul.f32 0.03125, %v134_v16 }
 0x16f   :  { %v142_v18 = vpop.xlane.xlu1 %141 }
 0x170   :  { %v150_v19 = vmul.f32 %v146_v17, %v146_v17  ;;  %v148_v20 = vmul.f32 0.03125, %v142_v18  ;;  %v156_v32 = vsub.f32 %v121_v9, %v146_v17 }
 0x171   :  { %v137_v21 = vpop.xlane.xlu0 %136 }
 0x172   :  { %v152_v22 = vsub.f32 %v148_v20, %v150_v19  ;;  %v147_v23 = vmul.f32 0.03125, %v137_v21  ;;  %v339_v20 = vld [vmem:[%s514_s8] ss:$0 sm:$0xff] }
 0x173   :  { %v145_v24 = vpop.xlane.xlu1 %144 }
 0x174   :  { %v154_v25 = vmax.f32 %v152_v22, 0.0  ;;  %v151_v26 = vmul.f32 %v147_v23, %v147_v23  ;;  %v149_v27 = vmul.f32 0.03125, %v145_v24  ;;  %v157_v37 = vsub.f32 %v126_v8, %v147_v23 }
 0x176   :  { %v158_v28 = vadd.f32 1e-05, %v154_v25  ;;  %v153_v29 = vsub.f32 %v149_v27, %v151_v26 }
 0x178   :  { %385 = vrsqrt.f32 %v158_v28  ;;  %v155_v30 = vmax.f32 %v153_v29, 0.0 }
 0x17a   :  { %v159_v31 = vadd.f32 1e-05, %v155_v30 }
 0x17c   :  { %387 = vrsqrt.f32 %v159_v31 }
 0x182   :  { %v386_v33 = vpop.eup %385 }
 0x183   :  { %v162_v35 = vmul.f32 %v386_v33, %v156_v32 }
 0x185   :  { %v170_v38 = vmul.f32 %v335_v34, %v162_v35 }
 0x186   :  { %v388_v39 = vpop.eup %387 }
 0x187   :  { %v178_v40 = vadd.f32 %v336_v36, %v170_v38  ;;  %v163_v41 = vmul.f32 %v388_v39, %v157_v37 }
 0x189   :  { %v182_v42 = vsel %vm131_vm4, %v178_v40, 0.0  ;;  %v188_v43 = vmul.f32 %v178_v40, %v178_v40  ;;  %v171_v44 = vmul.f32 %v335_v34, %v163_v41 }
 0x18a   :  { %183 = vadd.xlane.f32.xlu0 %v182_v42 }
 0x18b   :  { %v179_v45 = vadd.f32 %v336_v36, %v171_v44  ;;  %v190_v46 = vsel %vm131_vm4, %v188_v43, 0.0 }
 0x18d   :  { %v185_v47 = vsel %vm131_vm4, %v179_v45, 0.0  ;;  %v189_v48 = vmul.f32 %v179_v45, %v179_v45 }
 0x18e   :  { %191 = vadd.xlane.f32.xlu0 %v190_v46  ;;  %186 = vadd.xlane.f32.xlu1 %v185_v47 }
 0x18f   :  { %v193_v49 = vsel %vm131_vm4, %v189_v48, 0.0 }
 0x192   :  { %194 = vadd.xlane.f32.xlu1 %v193_v49 }
 0x217   :  { %v184_v56 = vpop.xlane.xlu0 %183 }
 0x218   :  { %v196_v57 = vmul.f32 0.03125, %v184_v56 }
 0x21a   :  { %v200_v60 = vmul.f32 %v196_v57, %v196_v57  ;;  %v206_v8 = vsub.f32 %v178_v40, %v196_v57 }
 0x21b   :  { %v187_v58 = vpop.xlane.xlu1 %186  ;;  %v192_v59 = vpop.xlane.xlu0 %191 }
 0x21c   :  { %v197_v61 = vmul.f32 0.03125, %v187_v58  ;;  %v198_v62 = vmul.f32 0.03125, %v192_v59 }
 0x21e   :  { %v202_v63 = vsub.f32 %v198_v62, %v200_v60  ;;  %v201_v1 = vmul.f32 %v197_v61, %v197_v61  ;;  %v207_v13 = vsub.f32 %v179_v45, %v197_v61 }
 0x21f   :  { %v195_v0 = vpop.xlane.xlu1 %194 }
 0x220   :  { %v204_v2 = vmax.f32 %v202_v63, 0.0  ;;  %v199_v3 = vmul.f32 0.03125, %v195_v0 }
 0x222   :  { %v208_v4 = vadd.f32 1e-05, %v204_v2  ;;  %v203_v5 = vsub.f32 %v199_v3, %v201_v1 }
 0x224   :  { %389 = vrsqrt.f32 %v208_v4  ;;  %v205_v6 = vmax.f32 %v203_v5, 0.0 }
 0x226   :  { %v209_v7 = vadd.f32 1e-05, %v205_v6 }
 0x228   :  { %391 = vrsqrt.f32 %v209_v7 }
 0x22e   :  { %v390_v9 = vpop.eup %389 }
 0x22f   :  { %v212_v11 = vmul.f32 %v390_v9, %v206_v8 }
 0x231   :  { %v220_v14 = vmul.f32 %v337_v10, %v212_v11 }
 0x232   :  { %v392_v15 = vpop.eup %391 }
 0x233   :  { %v213_v16 = vmul.f32 %v392_v15, %v207_v13  ;;  %v228_v17 = vadd.f32 %v338_v12, %v220_v14 }
 0x235   :  { %v221_v18 = vmul.f32 %v337_v10, %v213_v16  ;;  %367 = vmatprep.mubr.msk.f32.mxu1 %vm131_vm4, %v228_v17 }
 0x237   :  { %v229_v19 = vadd.f32 %v338_v12, %v221_v18 }
 0x239   :  { %368 = vmatmul.mubr.msk.f32.vlgmr.msra.gmra.mrb[0].mxu1 %vm131_vm4, %v229_v19 }
 0x30c   :  { %v369_v21 = vpop.f32.mrb[0].mxu1 }
 0x30d   :  { %v319_v22 = vadd.f32 %v369_v21, %v339_v20  ;;  %v313_v23 = vpop.f32.mrb[1].mxu1 }
 0x30e   :  { %v314_v24 = vadd.f32 %v339_v20, %v313_v23 }
 0x30f   :  { %393 = vtanh.f32 %v319_v22 }
 0x310   :  { %395 = vtanh.f32 %v314_v24 }
 0x319   :  { %v394_v25 = vpop.eup %393 }
 0x31a   :  { %v396_v26 = vpop.eup %395  ;;  %326 = vst.msk [vmem:[%s515_s9 + $0x8] sm:$0xff] %vm324_vm5, %v394_v25 }
 0x31b   :  { %325 = vst.msk [vmem:[%s515_s9] sm:$0xff] %vm324_vm5, %v396_v26 }

</bundles_post_ra>
